<compile_context>
chip_gen: v6e
topology: v6e:2x2x1
jax: 0.10.0
libtpu: 0.0.40
codegen_flags: <defaults>
</compile_context>

<pallas_src>
import jax
import jax.numpy as jnp
from jax.experimental import pallas as pl
from jax.experimental.pallas import tpu as pltpu


def _softmax_kernel(x_ref, o_ref):
    # x_ref / o_ref: (TILE_ROWS, L) tile in VMEM; softmax along the last axis.
    x = x_ref[...].astype(jnp.float32)
    m = jnp.max(x, axis=-1, keepdims=True)
    e = jnp.exp(x - m)
    s = jnp.sum(e, axis=-1, keepdims=True)
    # approx=True would move the divide to the EUP slot, but exact keeps the
    # tight (1e-6) match with torch/jax softmax and is off the critical path.
    o_ref[...] = (e * pl.reciprocal(s, approx=False)).astype(o_ref.dtype)


def _choose_tile_rows(rows, L, itemsize):
    """Largest row tile that (a) respects sublane packing and (b) keeps
    double-buffered in+out tiles well under the scoped VMEM limit on all
    generations (v5e 16 MiB default, v7x 64 MiB physical)."""
    sub = {4: 8, 2: 16, 1: 32}.get(itemsize, 8)  # sublane packing per dtype
    if rows <= sub:
        return rows  # block equals full row extent -> always legal
    # VMEM cost model: 2 buffers x (input tile + output tile); lane dim is
    # padded to a multiple of 128 in VMEM regardless of L.
    l_vmem = ((L + 127) // 128) * 128
    budget = 8 * 1024 * 1024  # bytes; conservative across v5e/v6e/v7x
    per_row_bytes = 4 * l_vmem * itemsize
    max_rows = max(sub, budget // per_row_bytes)
    tile = min(rows, max_rows, 1024)  # ~512-1024 rows is the measured sweet spot
    return max(sub, (tile // sub) * sub)


def embed_channel_norm(embed):
    """embed: (n, c, L) -> softmax over last dim, same shape/dtype."""
    n, c, L = embed.shape
    rows = n * c
    x2d = embed.reshape(rows, L)  # free (contiguous) view

    itemsize = jnp.dtype(embed.dtype).itemsize
    tile_rows = _choose_tile_rows(rows, L, itemsize)
    grid = (pl.cdiv(rows, tile_rows),)

    cost = pl.CostEstimate(
        flops=5 * rows * L,                      # max/sub/sum/mul per element
        transcendentals=rows * L,                # one exp per element
        bytes_accessed=2 * rows * L * itemsize,  # read + write
    )

    out2d = pl.pallas_call(
        _softmax_kernel,
        out_shape=jax.ShapeDtypeStruct((rows, L), embed.dtype),
        grid_spec=pl.GridSpec(
            grid=grid,
            in_specs=[pl.BlockSpec((tile_rows, L), lambda i: (i, 0))],
            out_specs=pl.BlockSpec((tile_rows, L), lambda i: (i, 0)),
        ),
        compiler_params=pltpu.CompilerParams(
            # Row tiles are independent -> shardable across TensorCores (v7x).
            dimension_semantics=("parallel",),
        ),
        cost_estimate=cost,
    )(x2d)

    return out2d.reshape(n, c, L)


if __name__ == "__main__":
    key = jax.random.PRNGKey(0)

    # Shape implied by the module's forward: (n, c, L).
    n, c, L = 2, 4, 16
    embed = jax.random.normal(key, (n, c, L), dtype=jnp.float32)

    out = embed_channel_norm(embed)
    out = jax.block_until_ready(out)

    ref = jax.nn.softmax(embed, axis=-1)
    assert out.shape == (n, c, L)
    assert jnp.allclose(out, ref, atol=1e-6, rtol=1e-6)

    # Second check: rows not divisible by the tile -> exercises edge-block
    # masking of the tiled grid (grid > 1).
    n2, c2, L2 = 3, 6, 16
    embed2 = jax.random.normal(jax.random.PRNGKey(1), (n2, c2, L2), dtype=jnp.float32)
    out2 = jax.block_until_ready(embed_channel_norm(embed2))
    ref2 = jax.nn.softmax(embed2, axis=-1)
    assert jnp.allclose(out2, ref2, atol=1e-6, rtol=1e-6)

    print("KERNEL_OK")
</pallas_src>

<mosaic_0001>
module attributes {stable_mosaic.version = 11 : i64} {
  func.func @_softmax_kernel(%arg0: i32, %arg1: memref<8x16xf32, #tpu.memory_space<vmem>>, %arg2: memref<8x16xf32, #tpu.memory_space<vmem>>) attributes {dimension_semantics = [#tpu.dimension_semantics<parallel>], iteration_bounds = array<i64: 1>, scalar_prefetch = 0 : i64, scratch_operands = 0 : i64, tpu.core_type = #tpu.core_type<tc>, window_params = [{transform_indices = @transform_0, window_bounds = array<i64: 8, 16>}, {transform_indices = @transform_1, window_bounds = array<i64: 8, 16>}]} {
    %c0 = arith.constant 0 : index
    %c0_0 = arith.constant 0 : index
    %0 = vector.load %arg1[%c0, %c0_0] : memref<8x16xf32, #tpu.memory_space<vmem>>, vector<8x16xf32>
    %cst = arith.constant dense<0xFF800000> : vector<8xf32>
    %1 = vector.multi_reduction <maximumf>, %0, %cst [1] : vector<8x16xf32> to vector<8xf32>
    %2 = vector.shape_cast %1 : vector<8xf32> to vector<8x1xf32>
    %3 = vector.broadcast %2 : vector<8x1xf32> to vector<8x16xf32>
    %4 = arith.subf %0, %3 : vector<8x16xf32>
    %5 = math.exp %4 : vector<8x16xf32>
    %cst_1 = arith.constant dense<0.000000e+00> : vector<8xf32>
    %6 = vector.multi_reduction <add>, %5, %cst_1 [1] : vector<8x16xf32> to vector<8xf32>
    %7 = vector.shape_cast %6 : vector<8xf32> to vector<8x1xf32>
    %8 = tpu.reciprocal %7 : vector<8x1xf32> -> vector<8x1xf32>
    %9 = vector.broadcast %8 : vector<8x1xf32> to vector<8x16xf32>
    %10 = arith.mulf %5, %9 : vector<8x16xf32>
    %c0_2 = arith.constant 0 : index
    %c0_3 = arith.constant 0 : index
    %11 = vector.load %arg2[%c0_2, %c0_3] : memref<8x16xf32, #tpu.memory_space<vmem>>, vector<8x16xf32>
    tpu.vector_store %arg2[%c0_2, %c0_3], %10 {strides = array<i32>} : memref<8x16xf32, #tpu.memory_space<vmem>>, vector<8x16xf32>,
    return
  }
  func.func @transform_0(%arg0: i32) -> (i32, i32) {
    %c0_i32 = arith.constant 0 : i32
    %c0_i32_0 = arith.constant 0 : i32
    return %arg0, %c0_i32 : i32, i32
  }
  func.func @transform_1(%arg0: i32) -> (i32, i32) {
    %c0_i32 = arith.constant 0 : i32
    %c0_i32_0 = arith.constant 0 : i32
    return %arg0, %c0_i32 : i32, i32
  }
}

</mosaic_0001>

<bundles_post_ra>
// kernel: tpu_custom_call.1
= control target key start
LH: loop header
LB: loop body
LE: loop exit
PB: predicated region body
PF: predicated region fallthrough
CT: control target
= control target key end

     0   :  { %6 = vsyncpa [#allocation3], 0  ;;  %s121_s0 = inlined_call_operand.hbm [shape: f32[8,16], index: 0, kind: input, shape index: {}]   ;;  %s122_s1 = inlined_call_operand.hbm [shape: f32[8,16], index: 1, kind: output, shape index: {}]  }
   0x1   :  { %7 = vsyncpa [#allocation4], 0  ;;  %s100_s6 = smov [#allocation2]  }
   0x2   :  { %s14_s7 = sshll.u32 %s100_s6, 4  ;;  %s15_s7 = int_to_ptr.vmem [resolvable:$true] %s14_s7 }
   0x3   :  { %s64_s8 = scalar_lea.vmem %s15_s7, 128  ;;  %p69_p1 = scmp.lt.s32.totalorder %s15_s7, %s15_s7 }
   0x4   :  { %p65_p0 = scmp.ne.s32.totalorder %s15_s7, %s64_s8  ;;  %p70_p2 = scmp.lt.s32.totalorder %s64_s8, %s64_s8 }
   0x6   :  { %p71_p3 = por %p70_p2, %p69_p1 }
   0x8   :  { %p72_p4 = pnand %p71_p3, %p65_p0 }
   0xa   :  { %75 = shalt.err (!%p72_p4)
}
   0xb   :  { %17 = dma.hbm_to_vmem [thread:$0]  %s121_s0, 128, %s15_s7, [#allocation3]  }
   0xc   :  { %96 = dma.done.wait [#allocation3], 128  }
   0xd   :  { %97 = vsyncadd [#allocation3], 4294967168  ;;  %vm22_vm0 = vcmask 130048   ;;  %v21_v0 = vld [vmem:[#allocation2] sm:$0xff]  ;;  %s101_s11 = smov [#allocation5]  }
   0xe   :  { %v23_v1 = vsel %vm22_vm0, %v21_v0, -inf  ;;  %s41_s12 = sshll.u32 %s101_s11, 4  ;;  %s42_s12 = int_to_ptr.vmem [resolvable:$true] %s41_s12 }
   0xf   :  { %24 = vmax.xlane.f32.xlu0 %v23_v1  ;;  %s76_s0 = scalar_lea.vmem %s42_s12, 128  ;;  %p81_p6 = scmp.lt.s32.totalorder %s42_s12, %s42_s12 }
  0x10   :  { %p77_p5 = scmp.ne.s32.totalorder %s42_s12, %s76_s0  ;;  %p82_p7 = scmp.lt.s32.totalorder %s76_s0, %s76_s0 }
  0x12   :  { %p83_p8 = por %p82_p7, %p81_p6 }
  0x14   :  { %p84_p9 = pnand %p83_p8, %p77_p5 }
  0x98   :  { %v25_v2 = vpop.xlane.xlu0 %24 }
  0x99   :  { %v26_v3 = vsub.f32 %v21_v0, %v25_v2 }
  0x9b   :  { %v27_v4 = vmul.f32 1.442695, %v26_v3 }
  0x9d   :  { %52 = vpow2.f32 %v27_v4 }
  0xaa   :  { %v53_v5 = vpop.eup %52 }
  0xab   :  { %v29_v6 = vsel %vm22_vm0, %v53_v5, 0.0 }
  0xac   :  { %30 = vadd.xlane.f32.xlu0 %v29_v6 }
 0x135   :  { %v31_v7 = vpop.xlane.xlu0 %30 }
 0x136   :  { %54 = vrcp.f32 %v31_v7 }
 0x143   :  { %v55_v8 = vpop.eup %54 }
 0x144   :  { %v33_v9 = vmul.f32 %v55_v8, %v53_v5 }
 0x146   :  { %34 = vst.msk [vmem:[#allocation5] sm:$0xff] %vm22_vm0, %v33_v9 }
 0x147   :  { %87 = shalt.err (!%p84_p9)
}
 0x148   :  { %44 = dma.vmem_to_hbm [thread:$0]  %s42_s12, 128, %s122_s1, [#allocation4]  }
 0x149   :  { %98 = dma.done.wait [#allocation4], 128  }
 0x14a   :  { %99 = vsyncadd [#allocation4], 4294967168 }
 0x14b   :  { %48 = vsyncpa [#allocation3], 1 }
 0x14c   :  { %49 = vsyncpa [#allocation4], 1 }

</bundles_post_ra>
